<compile_context>
chip_gen: v5e
topology: v5e:2x2
jax: 0.10.0
libtpu: 0.0.40
codegen_flags: <defaults>
</compile_context>

<pallas_src>
import jax
import jax.numpy as jnp
import numpy as np
from functools import partial
from jax.experimental import pallas as pl
from jax.experimental.pallas import tpu as pltpu


def circle_kernel(x_ref, p_ref, o_ref):
    # x_ref: (TILE_R, LANE_C) f32, lanes alternate [x0, x1, x0, x1, ...]
    # p_ref: (3,) f32 in SMEM: [w0, w1, b_eff]
    # o_ref: (TILE_R, LANE_C) f32; valid y values land on ODD lanes
    w0 = p_ref[0]
    w1 = p_ref[1]
    b = p_ref[2]

    x = x_ref[...]
    # Alternating per-lane weight pattern [w0, w1, w0, w1, ...] built from a (1, C) iota;
    # broadcasts over sublanes.  All VPU work — slots have slack in this mem-bound kernel.
    lane = jax.lax.broadcasted_iota(jnp.int32, (1, x.shape[1]), 1)
    w_pat = jnp.where(lane % 2 == 0, w0, w1)

    p = x * w_pat                                   # even lanes: x0*w0, odd lanes: x1*w1
    q = pltpu.roll(p, shift=1, axis=1)              # q[:, i] = p[:, i-1]  (XLU, ~free)
    # Odd lane 2k+1: x1_k*w1 + x0_k*w0 + b = y_k.  Even lanes are garbage (discarded).
    o_ref[...] = p + q + b


def circle_model_v0(x, params, *, tile_r=512, lane_c=1024):
    """x: [N, 2] float32 -> [N, 1] float32 (== layer_2(layer_1(x)) of CircleModelV0)."""
    assert lane_c % 128 == 0 and lane_c % 2 == 0
    assert tile_r % 8 == 0

    w1, b1, w2, b2 = params  # PyTorch layout: w1 (5,2), b1 (5,), w2 (1,5), b2 (1,)

    # --- Trace-time algebraic fold of the two affine layers ---
    w_eff = w1.T @ w2.T                      # (2, 1)
    b_eff = (b1 @ w2.T + b2)[0]              # scalar
    scal = jnp.stack([w_eff[0, 0], w_eff[1, 0], b_eff]).astype(jnp.float32)  # (3,) -> SMEM

    N = x.shape[0]
    total = 2 * N                            # interleaved feature stream length

    # Free view of the row-major [N, 2] buffer — no transpose, no extra HBM pass.
    flat = x.reshape(-1)                     # (2N,) = [x0_0, x1_0, x0_1, x1_1, ...]

    rows_needed = pl.cdiv(total, lane_c)
    tr = min(tile_r, max(8, ((rows_needed + 7) // 8) * 8))   # shrink tile for tiny N
    n_blocks = pl.cdiv(rows_needed, tr)
    rows_pad = n_blocks * tr
    pad = rows_pad * lane_c - total
    if pad:                                  # only the ragged tail; zero-pad rows discarded
        flat = jnp.pad(flat, (0, pad))
    slab = flat.reshape(rows_pad, lane_c)    # dense (sublane, lane) batch slab

    out_slab = pl.pallas_call(
        circle_kernel,
        out_shape=jax.ShapeDtypeStruct((rows_pad, lane_c), jnp.float32),
        grid=(n_blocks,),
        in_specs=[
            pl.BlockSpec((tr, lane_c), lambda i: (i, 0)),            # batch slab, pipelined
            pl.BlockSpec(memory_space=pltpu.MemorySpace.SMEM),       # folded scalars
        ],
        out_specs=pl.BlockSpec((tr, lane_c), lambda i: (i, 0)),
        compiler_params=pltpu.CompilerParams(
            # "parallel": independent batch rows.  On v7x, verify 2-TC sharding with xprof;
            # switch to pltpu.CORE_PARALLEL / core_map only if one TC can't saturate HBM.
            dimension_semantics=("parallel",),
            vmem_limit_bytes=32 * 1024 * 1024,
        ),
    )(slab, scal)

    # y_k sits at flat position 2k+1 of the output slab; stride it out once.
    return out_slab.reshape(-1)[:total].reshape(N, 2)[:, 1:]


def init_params(key):
    """Deterministic init mimicking nn.Linear defaults (uniform +/- 1/sqrt(fan_in)),
    stored in PyTorch layout: W [out, in], b [out]."""
    k1, k2, k3, k4 = jax.random.split(key, 4)
    b1_bound = 1.0 / np.sqrt(2.0)
    b2_bound = 1.0 / np.sqrt(5.0)
    w1 = jax.random.uniform(k1, (5, 2), jnp.float32, -b1_bound, b1_bound)
    b1 = jax.random.uniform(k2, (5,), jnp.float32, -b1_bound, b1_bound)
    w2 = jax.random.uniform(k3, (1, 5), jnp.float32, -b2_bound, b2_bound)
    b2 = jax.random.uniform(k4, (1,), jnp.float32, -b2_bound, b2_bound)
    return (w1, b1, w2, b2)


if __name__ == "__main__":
    key = jax.random.PRNGKey(0)
    key_x, key_x2, key_p = jax.random.split(key, 3)
    params = init_params(key_p)
    w1, b1, w2, b2 = params

    fwd = jax.jit(partial(circle_model_v0))

    # Small batch (module-consistent): N=8, features=2.
    N = 8
    x = jax.random.normal(key_x, (N, 2), dtype=jnp.float32)
    out = jax.block_until_ready(fwd(x, params))
    ref = (x @ w1.T + b1) @ w2.T + b2
    np.testing.assert_allclose(np.asarray(out), np.asarray(ref), rtol=1e-4, atol=1e-5)
    assert out.shape == (N, 1) and out.dtype == jnp.float32

    # Extra check exercising multiple pipelined grid steps (small tiles on purpose).
    N2 = 2048
    x2 = jax.random.normal(key_x2, (N2, 2), dtype=jnp.float32)
    out2 = jax.block_until_ready(circle_model_v0(x2, params, tile_r=8, lane_c=128))
    ref2 = (x2 @ w1.T + b1) @ w2.T + b2
    np.testing.assert_allclose(np.asarray(out2), np.asarray(ref2), rtol=1e-4, atol=1e-5)
    assert out2.shape == (N2, 1)

    print("KERNEL_OK")
</pallas_src>

<mosaic_0001>
module attributes {stable_mosaic.version = 11 : i64} {
  func.func @circle_kernel(%arg0: i32, %arg1: memref<8x1024xf32, #tpu.memory_space<vmem>>, %arg2: memref<3xf32, #tpu.memory_space<smem>>, %arg3: memref<8x1024xf32, #tpu.memory_space<vmem>>) attributes {dimension_semantics = [#tpu.dimension_semantics<parallel>], iteration_bounds = array<i64: 1>, scalar_prefetch = 0 : i64, scratch_operands = 0 : i64, tpu.core_type = #tpu.core_type<tc>, window_params = [{transform_indices = @transform_0, window_bounds = array<i64: 8, 1024>}, {transform_indices = @transform_1, window_bounds = array<i64: 3>}, {transform_indices = @transform_2, window_bounds = array<i64: 8, 1024>}]} {
    %c0 = arith.constant 0 : index
    %0 = memref.load %arg2[%c0] : memref<3xf32, #tpu.memory_space<smem>>
    %c1 = arith.constant 1 : index
    %1 = memref.load %arg2[%c1] : memref<3xf32, #tpu.memory_space<smem>>
    %c2 = arith.constant 2 : index
    %2 = memref.load %arg2[%c2] : memref<3xf32, #tpu.memory_space<smem>>
    %c0_0 = arith.constant 0 : index
    %c0_1 = arith.constant 0 : index
    %3 = vector.load %arg1[%c0_0, %c0_1] : memref<8x1024xf32, #tpu.memory_space<vmem>>, vector<8x1024xf32>
    %4 = tpu.iota {dimensions = array<i32: 1>} : vector<1x1024xi32>
    %c2_i32 = arith.constant 2 : i32
    %c0_i32 = arith.constant 0 : i32
    %5 = arith.cmpi eq, %c2_i32, %c0_i32 : i32
    %c1_i32 = arith.constant 1 : i32
    %6 = arith.select %5, %c1_i32, %c2_i32 : i32
    %7 = vector.broadcast %6 : i32 to vector<1x1024xi32>
    %8 = arith.remsi %4, %7 : vector<1x1024xi32>
    %c0_i32_2 = arith.constant 0 : i32
    %9 = vector.broadcast %c0_i32_2 : i32 to vector<1x1024xi32>
    %10 = arith.cmpi ne, %8, %9 : vector<1x1024xi32>
    %c0_i32_3 = arith.constant 0 : i32
    %11 = vector.broadcast %c0_i32_3 : i32 to vector<1x1024xi32>
    %12 = arith.cmpi slt, %8, %11 : vector<1x1024xi32>
    %c0_i32_4 = arith.constant 0 : i32
    %13 = arith.cmpi slt, %6, %c0_i32_4 : i32
    %14 = vector.broadcast %13 : i1 to vector<1x1024xi1>
    %15 = vector.broadcast %14 : vector<1x1024xi1> to vector<1x1024xi1>
    %16 = arith.xori %12, %15 : vector<1x1024xi1>
    %17 = arith.andi %16, %10 : vector<1x1024xi1>
    %18 = vector.broadcast %6 : i32 to vector<1x1024xi32>
    %19 = arith.addi %8, %18 : vector<1x1024xi32>
    %20 = arith.select %17, %19, %8 : vector<1x1024xi1>, vector<1x1024xi32>
    %c0_i32_5 = arith.constant 0 : i32
    %21 = vector.broadcast %c0_i32_5 : i32 to vector<1x1024xi32>
    %22 = arith.cmpi eq, %20, %21 : vector<1x1024xi32>
    %23 = vector.broadcast %0 : f32 to vector<1x1024xf32>
    %24 = vector.broadcast %1 : f32 to vector<1x1024xf32>
    %25 = arith.select %22, %23, %24 : vector<1x1024xi1>, vector<1x1024xf32>
    %26 = vector.broadcast %25 : vector<1x1024xf32> to vector<8x1024xf32>
    %27 = arith.mulf %3, %26 : vector<8x1024xf32>
    %c1_i32_6 = arith.constant 1 : i32
    %28 = tpu.dynamic_rotate %27 by %c1_i32_6 dim 1 : vector<8x1024xf32>, i32 -> vector<8x1024xf32>
    %29 = arith.addf %27, %28 : vector<8x1024xf32>
    %30 = vector.broadcast %2 : f32 to vector<8x1024xf32>
    %31 = arith.addf %29, %30 : vector<8x1024xf32>
    %c0_7 = arith.constant 0 : index
    %c0_8 = arith.constant 0 : index
    %32 = vector.load %arg3[%c0_7, %c0_8] : memref<8x1024xf32, #tpu.memory_space<vmem>>, vector<8x1024xf32>
    tpu.vector_store %arg3[%c0_7, %c0_8], %31 {strides = array<i32>} : memref<8x1024xf32, #tpu.memory_space<vmem>>, vector<8x1024xf32>,
    return
  }
  func.func @transform_0(%arg0: i32) -> (i32, i32) {
    %c0_i32 = arith.constant 0 : i32
    %c0_i32_0 = arith.constant 0 : i32
    return %arg0, %c0_i32 : i32, i32
  }
  func.func @transform_1(%arg0: i32) -> i32 {
    %c0_i32 = arith.constant 0 : i32
    %c0_i32_0 = arith.constant 0 : i32
    return %c0_i32 : i32
  }
  func.func @transform_2(%arg0: i32) -> (i32, i32) {
    %c0_i32 = arith.constant 0 : i32
    %c0_i32_0 = arith.constant 0 : i32
    return %arg0, %c0_i32 : i32, i32
  }
}

</mosaic_0001>

<bundles_post_ra>
// kernel: circle_model_v0.1
= control target key start
LH: loop header
LB: loop body
LE: loop exit
PB: predicated region body
PF: predicated region fallthrough
CT: control target
= control target key end

     0   :  { %7 = vsyncpa [#allocation3], 0  ;;  %s239_s12 = smov [#allocation2]   ;;  %s358_s0 = inlined_call_operand.vmem [shape: f32[8,1024], index: 0, kind: input, shape index: {}]   ;;  %s359_s1 = inlined_call_operand.vmem [shape: f32[3], index: 1, kind: input, shape index: {}]   ;;  %s360_s2 = inlined_call_operand.vmem [shape: f32[8,1024], index: 2, kind: output, shape index: {}]  }
   0x1   :  { %s15_s11 = sshll.u32 %s359_s1, 4  ;;  %s16_s11 = int_to_ptr.vmem [resolvable:$true] %s15_s11 }
   0x2   :  { %18 = dma.vmem_to_smem %s16_s11, 16, %s239_s12, [#allocation3]  }
   0x3   :  { %237 = dma.done.wait [#allocation3], 16  }
   0x4   :  { %238 = vsyncadd [#allocation3], 4294967280 }
   0x5   :  { %23 = sfence }
   0x6   :  { %s24_s13 = sld [smem:[#allocation2]]  ;;  %v35_v0 = vlaneseq  ;;  %v27_v7 = vld [vmem:[%s358_s0] sm:$0xff]  ;;  %v29_v12 = vld [vmem:[%s358_s0 + $0x10] sm:$0xff]  ;;  %s240_s20 = smov 1   ;;  %v28_v25 = vld [vmem:[%s358_s0 + $0x8] sm:$0xff] }
   0x7   :  { %s221_s14 = sld [smem:[#allocation2 + $0x1]]  ;;  %v31_v24 = vld [vmem:[%s358_s0 + $0x20] sm:$0xff]  ;;  %v30_v29 = vld [vmem:[%s358_s0 + $0x18] sm:$0xff]  ;;  %v32_v36 = vld [vmem:[%s358_s0 + $0x28] sm:$0xff] }
   0x8   :  { %v259_v1 = vand.u32 127, %v35_v0  ;;  %v33_v39 = vld [vmem:[%s358_s0 + $0x30] sm:$0xff]  ;;  %v34_v41 = vld [vmem:[%s358_s0 + $0x38] sm:$0xff]  ;;  %s222_s3 = sld [smem:[#allocation2 + $0x2]] }
   0xa   :  { %v48_v2 = vand.u32 1, %v259_v1  ;;  %v38_v3 = vadd.s32 256, %v259_v1  ;;  %v37_v4 = vadd.s32 128, %v259_v1  ;;  %v39_v5 = vadd.s32 384, %v259_v1 }
   0xb   :  { %v40_v6 = vadd.s32 512, %v259_v1  ;;  %v41_v16 = vadd.s32 640, %v259_v1  ;;  %v42_v20 = vadd.s32 768, %v259_v1  ;;  %v43_v23 = vadd.s32 896, %v259_v1 }
   0xc   :  { %vm140_vm0 = vcmp.eq.s32.totalorder %v48_v2, 0  ;;  %v148_v8 = vstv %s24_s13  ;;  %v62_v9 = vand.u32 1, %v38_v3  ;;  %v55_v10 = vand.u32 1, %v37_v4 }
   0xd   :  { %v149_v11 = vstv %s221_s14  ;;  %v69_v13 = vand.u32 1, %v39_v5  ;;  %v76_v15 = vand.u32 1, %v40_v6  ;;  %v83_v28 = vand.u32 1, %v41_v16 }
   0xe   :  { %v150_v14 = vsel %vm140_vm0, %v148_v8, %v149_v11  ;;  %vm142_vm1 = vcmp.eq.s32.totalorder %v62_v9, 0  ;;  %vm275_vm2 = vcmp.eq.s32.totalorder %v55_v10, 0  ;;  %v90_v31 = vand.u32 1, %v42_v20 }
   0xf   :  { %v273_v17 = vmul.f32 %v150_v14, %v27_v7  ;;  %v152_v18 = vsel %vm142_vm1, %v148_v8, %v149_v11  ;;  %vm280_vm3 = vcmp.eq.s32.totalorder %v69_v13, 0  ;;  %vm144_vm4 = vcmp.eq.s32.totalorder %v76_v15, 0 }
  0x10   :  { %v160_v21 = vmul.f32 %v152_v18, %v29_v12  ;;  %v151_v26 = vsel %vm275_vm2, %v148_v8, %v149_v11  ;;  %v154_v27 = vsel %vm144_vm4, %v148_v8, %v149_v11  ;;  %v153_v30 = vsel %vm280_vm3, %v148_v8, %v149_v11 }
  0x11   :  { %166 = vrot.lane.b32.xlu0 %v273_v17, %s240_s20  ;;  %v162_v32 = vmul.f32 %v154_v27, %v31_v24  ;;  %v97_v33 = vand.u32 1, %v43_v23  ;;  %vm145_vm5 = vcmp.eq.s32.totalorder %v83_v28, 0  ;;  %v159_v34 = vmul.f32 %v151_v26, %v28_v25 }
  0x12   :  { %170 = vrot.lane.b32.xlu1 %v160_v21, %s240_s20  ;;  %v161_v35 = vmul.f32 %v153_v30, %v30_v29  ;;  %v155_v37 = vsel %vm145_vm5, %v148_v8, %v149_v11  ;;  %vm146_vm6 = vcmp.eq.s32.totalorder %v90_v31, 0  ;;  %vm182_vm8 = vcmp.lt.s32.totalorder %v259_v1, 1 }
  0x13   :  { %174 = vrot.lane.b32.xlu2 %v162_v32, %s240_s20  ;;  %vm147_vm7 = vcmp.eq.s32.totalorder %v97_v33, 0  ;;  %v163_v38 = vmul.f32 %v155_v37, %v32_v36  ;;  %v156_v40 = vsel %vm146_vm6, %v148_v8, %v149_v11  ;;  %v199_v49 = vstv %s222_s3 }
  0x14   :  { %v157_v42 = vsel %vm147_vm7, %v148_v8, %v149_v11  ;;  %v164_v43 = vmul.f32 %v156_v40, %v33_v39 }
  0x15   :  { %v165_v44 = vmul.f32 %v157_v42, %v34_v41 }
  0x19   :  { %168 = vrot.lane.b32.xlu0 %v159_v34, %s240_s20 }
  0x1a   :  { %172 = vrot.lane.b32.xlu1 %v161_v35, %s240_s20 }
  0x1b   :  { %176 = vrot.lane.b32.xlu2 %v163_v38, %s240_s20 }
  0x21   :  { %178 = vrot.lane.b32.xlu0 %v164_v43, %s240_s20 }
  0x22   :  { %180 = vrot.lane.b32.xlu1 %v165_v44, %s240_s20 }
  0x6d   :  { %v175_v45 = vpop.permute.xlu2 %174 }
  0x75   :  { %v177_v46 = vpop.permute.xlu2 %176 }
  0x76   :  { %v185_v47 = vsel %vm182_vm8, %v175_v45, %v177_v46 }
  0x77   :  { %v196_v48 = vadd.f32 %v185_v47, %v163_v38 }
  0x79   :  { %v205_v50 = vadd.f32 %v199_v49, %v196_v48 }
  0x7b   :  { %213 = vst [vmem:[%s360_s2 + $0x28] sm:$0xff] %v205_v50 }
  0x83   :  { %v167_v51 = vpop.permute.xlu0 %166 }
  0x84   :  { %v171_v52 = vpop.permute.xlu1 %170 }
  0x8b   :  { %v169_v53 = vpop.permute.xlu0 %168 }
  0x8c   :  { %v188_v54 = vsel %vm182_vm8, %v169_v53, %v171_v52  ;;  %v189_v55 = vsel %vm182_vm8, %v167_v51, %v169_v53  ;;  %v173_v56 = vpop.permute.xlu1 %172 }
  0x8d   :  { %v192_v57 = vadd.f32 %v189_v55, %v159_v34  ;;  %v193_v58 = vadd.f32 %v188_v54, %v160_v21  ;;  %v186_v59 = vsel %vm182_vm8, %v173_v56, %v175_v45  ;;  %v187_v60 = vsel %vm182_vm8, %v171_v52, %v173_v56 }
  0x8e   :  { %v194_v61 = vadd.f32 %v187_v60, %v161_v35  ;;  %v195_v62 = vadd.f32 %v186_v59, %v162_v32 }
  0x8f   :  { %v201_v63 = vadd.f32 %v199_v49, %v192_v57  ;;  %v202_v0 = vadd.f32 %v199_v49, %v193_v58 }
  0x90   :  { %v203_v2 = vadd.f32 %v199_v49, %v194_v61  ;;  %v204_v3 = vadd.f32 %v199_v49, %v195_v62 }
  0x91   :  { %209 = vst [vmem:[%s360_s2 + $0x8] sm:$0xff] %v201_v63 }
  0x92   :  { %210 = vst [vmem:[%s360_s2 + $0x10] sm:$0xff] %v202_v0 }
  0x93   :  { %211 = vst [vmem:[%s360_s2 + $0x18] sm:$0xff] %v203_v2  ;;  %v179_v4 = vpop.permute.xlu0 %178 }
  0x94   :  { %212 = vst [vmem:[%s360_s2 + $0x20] sm:$0xff] %v204_v3  ;;  %v181_v5 = vpop.permute.xlu1 %180  ;;  %v184_v6 = vsel %vm182_vm8, %v177_v46, %v179_v4 }
  0x95   :  { %v190_v7 = vsel %vm182_vm8, %v181_v5, %v167_v51  ;;  %v183_v8 = vsel %vm182_vm8, %v179_v4, %v181_v5  ;;  %v197_v9 = vadd.f32 %v184_v6, %v164_v43 }
  0x96   :  { %v191_v10 = vadd.f32 %v190_v7, %v273_v17  ;;  %v198_v11 = vadd.f32 %v183_v8, %v165_v44 }
  0x97   :  { %v206_v12 = vadd.f32 %v199_v49, %v197_v9 }
  0x98   :  { %v200_v13 = vadd.f32 %v199_v49, %v191_v10  ;;  %v207_v14 = vadd.f32 %v199_v49, %v198_v11 }
  0x99   :  { %214 = vst [vmem:[%s360_s2 + $0x30] sm:$0xff] %v206_v12 }
  0x9a   :  { %208 = vst [vmem:[%s360_s2] sm:$0xff] %v200_v13 }
  0x9b   :  { %215 = vst [vmem:[%s360_s2 + $0x38] sm:$0xff] %v207_v14 }
  0x9c   :  { %220 = vsyncpa [#allocation3], 1 }

</bundles_post_ra>
